<compile_context>
chip_gen: v6e
topology: v6e:2x2x1
jax: 0.10.0
libtpu: 0.0.40
codegen_flags: <defaults>
</compile_context>

<pallas_src>
import jax
import jax.numpy as jnp
from jax.experimental import pallas as pl
from jax.experimental.pallas import tpu as pltpu


def beta_intersection_kernel(alpha_ref, beta_ref, w1a_ref, w1b_ref, b1_ref,
                             w2_ref, b2_ref, out_ref):
    """alpha/beta: (N, TB, D); w1a/w1b: (D, 2D); b1: (1, 2D); w2: (2D, D);
    b2: (1, D); out: (2, TB, D) with row 0 = alpha_out, row 1 = beta_out."""
    n, tb, d = alpha_ref.shape
    dot_dt = w1a_ref.dtype            # MXU operand dtype (bf16 by default)

    alpha = alpha_ref[...]
    beta = beta_ref[...]

    # Flatten leading dims only (lane axis unchanged; tb is a multiple of 8 so
    # this collapse is layout-preserving) and feed the MXU (N*TB, D) rows.
    alpha2d = alpha.reshape(n * tb, d).astype(dot_dt)
    beta2d = beta.reshape(n * tb, d).astype(dot_dt)

    # layer1: split matmul replaces cat([alpha, beta], -1) @ W1 (no lane concat).
    # bf16 (or native) operands, f32 accumulation; bias + relu stay in f32.
    h = (jnp.dot(alpha2d, w1a_ref[...], preferred_element_type=jnp.float32)
         + jnp.dot(beta2d, w1b_ref[...], preferred_element_type=jnp.float32)
         + b1_ref[...])
    h = jnp.maximum(h, 0.0).astype(dot_dt)

    # layer2 -> attention logits, back to (N, TB, D) (leading-dim reshape only).
    logits = (jnp.dot(h, w2_ref[...], preferred_element_type=jnp.float32)
              + b2_ref[...]).reshape(n, tb, d)

    # softmax over axis 0 fused with the weighted sums (all f32 on the VPU):
    #   out = sum_n softmax(logits)[n] * x[n] = (sum_n e[n] * x[n]) / (sum_n e[n])
    m = jnp.max(logits, axis=0, keepdims=True)
    e = jnp.exp(logits - m)                              # (N, TB, D) f32
    inv_denom = 1.0 / jnp.sum(e, axis=0)                 # (TB, D) f32, exact divide

    alpha_f = alpha.astype(jnp.float32)
    beta_f = beta.astype(jnp.float32)
    out_ref[0, :, :] = (jnp.sum(e * alpha_f, axis=0) * inv_denom).astype(out_ref.dtype)
    out_ref[1, :, :] = (jnp.sum(e * beta_f, axis=0) * inv_denom).astype(out_ref.dtype)


def _vmem_budget_bytes():
    """Generation-aware budget for the per-step VMEM footprint."""
    try:
        cap = int(pltpu.get_tpu_info().vmem_capacity_bytes)
    except Exception:
        cap = 64 << 20  # conservative (v7x-sized) fallback, also used in interpret mode
    return max(8 << 20, min(cap // 2, 48 << 20))


def _vmem_estimate(N, tb, D, in_item, w_item, out_item):
    """Rough per-step VMEM footprint: double-buffered input/output blocks,
    resident weights (counted double-buffered, conservatively), biases, and
    f32 intermediates (h, logits/e, temps)."""
    inputs = 2 * 2 * N * tb * D * in_item              # alpha + beta blocks
    outputs = 2 * 2 * tb * D * out_item                # (2, tb, D) block
    weights = 2 * (2 * D * 2 * D + 2 * D * D) * w_item + 2 * 3 * D * 4
    interm = 4 * (2 * N * tb * 2 * D + 3 * N * tb * D + 4 * tb * D)
    return inputs + outputs + weights + interm


def _pick_tile_b(N, B, D, in_item, w_item, out_item, budget):
    """Batch tile: multiple of 8 (layout rule), largest that fits the VMEM
    budget, preferring an even (or unit) grid length so v7x's two TensorCores
    split the 'parallel' batch axis evenly."""
    cands = [t for t in range(8, B + 1, 8) if B % t == 0]
    fits = [t for t in cands
            if _vmem_estimate(N, t, D, in_item, w_item, out_item) <= budget]
    if not fits:
        return 8
    fits.sort()
    even = [t for t in fits if (B // t) == 1 or (B // t) % 2 == 0]
    return (even or fits)[-1]


def beta_intersection(alpha, beta, w1, b1, w2, b2, *, mxu_dtype=jnp.bfloat16, tb=None):
    """alpha, beta: (N, B, D). w1: (2D, 2D) (in,out), w2: (2D, D) (in,out).
    mxu_dtype: dtype used for matmul operands (None -> native/full precision).
    Returns (alpha_out, beta_out), each (B, D)."""
    N, B, D = alpha.shape
    assert beta.shape == (N, B, D)
    assert w1.shape == (2 * D, 2 * D) and w2.shape == (2 * D, D)
    out_dtype = alpha.dtype
    dot_dt = jnp.dtype(mxu_dtype) if mxu_dtype is not None else jnp.dtype(alpha.dtype)

    # Pad the batch to a multiple of 8 so the tiled path always applies.
    B_pad = ((B + 7) // 8) * 8
    if B_pad != B:
        pad = B_pad - B
        alpha = jnp.pad(alpha, ((0, 0), (0, pad), (0, 0)))
        beta = jnp.pad(beta, ((0, 0), (0, pad), (0, 0)))

    in_item = jnp.dtype(alpha.dtype).itemsize
    out_item = jnp.dtype(out_dtype).itemsize
    if tb is None:
        tb = _pick_tile_b(N, B_pad, D, in_item, dot_dt.itemsize, out_item,
                          _vmem_budget_bytes())
    assert B_pad % tb == 0 and tb % 8 == 0, "tb must divide padded B and be a multiple of 8"
    grid = (B_pad // tb,)

    # Split W1 outside the kernel so the lane-axis concat never happens on-chip;
    # cast weights once to the MXU operand dtype (halves resident VMEM for bf16).
    w1a = w1[:D, :].astype(dot_dt)
    w1b = w1[D:, :].astype(dot_dt)
    w2c = w2.astype(dot_dt)
    b1_2d = b1.reshape(1, 2 * D).astype(jnp.float32)
    b2_2d = b2.reshape(1, D).astype(jnp.float32)

    est = _vmem_estimate(N, tb, D, in_item, dot_dt.itemsize, out_item)
    vmem_limit = int(min(max(2 * est, 32 << 20), 48 << 20))

    out = pl.pallas_call(
        beta_intersection_kernel,
        out_shape=jax.ShapeDtypeStruct((2, B_pad, D), out_dtype),
        grid_spec=pltpu.PrefetchScalarGridSpec(
            num_scalar_prefetch=0,
            grid=grid,
            in_specs=[
                pl.BlockSpec((N, tb, D), lambda i: (0, i, 0)),   # alpha tile
                pl.BlockSpec((N, tb, D), lambda i: (0, i, 0)),   # beta tile
                pl.BlockSpec((D, 2 * D), lambda i: (0, 0)),      # w1[:D]  (resident)
                pl.BlockSpec((D, 2 * D), lambda i: (0, 0)),      # w1[D:]  (resident)
                pl.BlockSpec((1, 2 * D), lambda i: (0, 0)),      # b1      (resident)
                pl.BlockSpec((2 * D, D), lambda i: (0, 0)),      # w2      (resident)
                pl.BlockSpec((1, D), lambda i: (0, 0)),          # b2      (resident)
            ],
            out_specs=pl.BlockSpec((2, tb, D), lambda i: (0, i, 0)),
        ),
        compiler_params=pltpu.CompilerParams(
            dimension_semantics=("parallel",),   # batch axis shards across TCs (v7x)
            vmem_limit_bytes=vmem_limit,
        ),
    )(alpha, beta, w1a, w1b, b1_2d, w2c, b2_2d)

    return out[0, :B, :], out[1, :B, :]


# ------------------------- test / demo helpers -------------------------

def xavier_uniform(key, shape_out_in):
    fan_out, fan_in = shape_out_in
    limit = jnp.sqrt(6.0 / (fan_in + fan_out))
    return jax.random.uniform(key, shape_out_in, jnp.float32, -limit, limit)


def reference_f32(alpha, beta, w1, b1, w2, b2):
    """Exact f32 reference (HIGHEST-precision matmuls)."""
    hp = jax.lax.Precision.HIGHEST
    all_emb = jnp.concatenate([alpha, beta], axis=-1)
    h = jax.nn.relu(jnp.dot(all_emb, w1, precision=hp) + b1)
    attn = jax.nn.softmax(jnp.dot(h, w2, precision=hp) + b2, axis=0)
    return jnp.sum(attn * alpha, axis=0), jnp.sum(attn * beta, axis=0)


def reference_matched(alpha, beta, w1, b1, w2, b2, dot_dt):
    """Reference mirroring the kernel's bf16-operand / f32-accumulate matmuls."""
    all_emb = jnp.concatenate([alpha, beta], axis=-1).astype(dot_dt)
    h = jax.nn.relu(jnp.dot(all_emb, w1.astype(dot_dt),
                            preferred_element_type=jnp.float32) + b1)
    logits = jnp.dot(h.astype(dot_dt), w2.astype(dot_dt),
                     preferred_element_type=jnp.float32) + b2
    attn = jax.nn.softmax(logits, axis=0)
    return (jnp.sum(attn * alpha.astype(jnp.float32), axis=0),
            jnp.sum(attn * beta.astype(jnp.float32), axis=0))


if __name__ == "__main__":
    key = jax.random.PRNGKey(0)
    k_a, k_b, k_w1, k_w2 = jax.random.split(key, 4)

    N, B, D = 4, 32, 32  # embeddings intersected, batch, embedding dim

    alpha = jax.random.uniform(k_a, (N, B, D), jnp.float32, 0.05, 1.0)
    beta = jax.random.uniform(k_b, (N, B, D), jnp.float32, 0.05, 1.0)

    # nn.Linear weights are (out, in); store transposed (in, out) for the kernel.
    w1 = xavier_uniform(k_w1, (2 * D, 2 * D)).T
    b1 = jnp.zeros((2 * D,), jnp.float32)  # deterministic bias init
    w2 = xavier_uniform(k_w2, (D, 2 * D)).T
    b2 = jnp.zeros((D,), jnp.float32)

    # 1) Exact path (mxu_dtype=None, auto tile) vs. the f32 reference.
    a32, b32 = beta_intersection(alpha, beta, w1, b1, w2, b2, mxu_dtype=None)
    jax.block_until_ready((a32, b32))
    a_ref, b_ref = reference_f32(alpha, beta, w1, b1, w2, b2)
    assert a32.shape == (B, D) and b32.shape == (B, D)
    err_a = float(jnp.max(jnp.abs(a32 - a_ref)))
    err_b = float(jnp.max(jnp.abs(b32 - b_ref)))
    assert jnp.allclose(a32, a_ref, atol=2e-3, rtol=2e-3), f"f32 alpha max err={err_a}"
    assert jnp.allclose(b32, b_ref, atol=2e-3, rtol=2e-3), f"f32 beta max err={err_b}"

    # 2) Default bf16-MXU path (explicit tb=8 exercises a 4-step grid) vs. a
    #    matched-precision reference, plus a loose sanity check vs. exact.
    abf, bbf = beta_intersection(alpha, beta, w1, b1, w2, b2, tb=8)
    jax.block_until_ready((abf, bbf))
    a_m, b_m = reference_matched(alpha, beta, w1, b1, w2, b2, jnp.bfloat16)
    assert jnp.allclose(abf, a_m, atol=2e-3, rtol=2e-3), \
        f"bf16 alpha err={float(jnp.max(jnp.abs(abf - a_m)))}"
    assert jnp.allclose(bbf, b_m, atol=2e-3, rtol=2e-3), \
        f"bf16 beta err={float(jnp.max(jnp.abs(bbf - b_m)))}"
    assert jnp.allclose(abf, a_ref, atol=3e-2, rtol=3e-2)
    assert jnp.allclose(bbf, b_ref, atol=3e-2, rtol=3e-2)

    print("KERNEL_OK")
</pallas_src>

<mosaic_0001>
module attributes {stable_mosaic.version = 11 : i64} {
  func.func @beta_intersection_kernel(%arg0: i32, %arg1: memref<4x32x32xf32, #tpu.memory_space<vmem>>, %arg2: memref<4x32x32xf32, #tpu.memory_space<vmem>>, %arg3: memref<32x64xf32, #tpu.memory_space<vmem>>, %arg4: memref<32x64xf32, #tpu.memory_space<vmem>>, %arg5: memref<1x64xf32, #tpu.memory_space<vmem>>, %arg6: memref<64x32xf32, #tpu.memory_space<vmem>>, %arg7: memref<1x32xf32, #tpu.memory_space<vmem>>, %arg8: memref<2x32x32xf32, #tpu.memory_space<vmem>>) attributes {dimension_semantics = [#tpu.dimension_semantics<parallel>], iteration_bounds = array<i64: 1>, scalar_prefetch = 0 : i64, scratch_operands = 0 : i64, tpu.core_type = #tpu.core_type<tc>, window_params = [{transform_indices = @transform_0, window_bounds = array<i64: 4, 32, 32>}, {transform_indices = @transform_1, window_bounds = array<i64: 4, 32, 32>}, {pipeline_mode = #tpu.pipeline_mode<synchronous>, transform_indices = @transform_2, window_bounds = array<i64: 32, 64>}, {pipeline_mode = #tpu.pipeline_mode<synchronous>, transform_indices = @transform_3, window_bounds = array<i64: 32, 64>}, {pipeline_mode = #tpu.pipeline_mode<synchronous>, transform_indices = @transform_4, window_bounds = array<i64: 1, 64>}, {pipeline_mode = #tpu.pipeline_mode<synchronous>, transform_indices = @transform_5, window_bounds = array<i64: 64, 32>}, {pipeline_mode = #tpu.pipeline_mode<synchronous>, transform_indices = @transform_6, window_bounds = array<i64: 1, 32>}, {transform_indices = @transform_7, window_bounds = array<i64: 2, 32, 32>}]} {
    %c0 = arith.constant 0 : index
    %c0_0 = arith.constant 0 : index
    %c0_1 = arith.constant 0 : index
    %0 = vector.load %arg1[%c0, %c0_0, %c0_1] : memref<4x32x32xf32, #tpu.memory_space<vmem>>, vector<4x32x32xf32>
    %c0_2 = arith.constant 0 : index
    %c0_3 = arith.constant 0 : index
    %c0_4 = arith.constant 0 : index
    %1 = vector.load %arg2[%c0_2, %c0_3, %c0_4] : memref<4x32x32xf32, #tpu.memory_space<vmem>>, vector<4x32x32xf32>
    %2 = vector.shape_cast %0 : vector<4x32x32xf32> to vector<128x32xf32>
    %3 = vector.shape_cast %1 : vector<4x32x32xf32> to vector<128x32xf32>
    %c0_5 = arith.constant 0 : index
    %c0_6 = arith.constant 0 : index
    %4 = vector.load %arg3[%c0_5, %c0_6] : memref<32x64xf32, #tpu.memory_space<vmem>>, vector<32x64xf32>
    %cst = arith.constant dense<0.000000e+00> : vector<128x64xf32>
    %5 = tpu.matmul %2, %4, %cst {dimension_numbers = #tpu.dot_dimension_numbers<[1], [0], [0], [1], [0, 0, 1, 1], [], []>} : vector<128x32xf32>, vector<32x64xf32>, vector<128x64xf32> -> vector<128x64xf32>
    %c0_7 = arith.constant 0 : index
    %c0_8 = arith.constant 0 : index
    %6 = vector.load %arg4[%c0_7, %c0_8] : memref<32x64xf32, #tpu.memory_space<vmem>>, vector<32x64xf32>
    %cst_9 = arith.constant dense<0.000000e+00> : vector<128x64xf32>
    %7 = tpu.matmul %3, %6, %cst_9 {dimension_numbers = #tpu.dot_dimension_numbers<[1], [0], [0], [1], [0, 0, 1, 1], [], []>} : vector<128x32xf32>, vector<32x64xf32>, vector<128x64xf32> -> vector<128x64xf32>
    %8 = arith.addf %5, %7 : vector<128x64xf32>
    %c0_10 = arith.constant 0 : index
    %c0_11 = arith.constant 0 : index
    %9 = vector.load %arg5[%c0_10, %c0_11] : memref<1x64xf32, #tpu.memory_space<vmem>>, vector<1x64xf32>
    %10 = vector.broadcast %9 : vector<1x64xf32> to vector<128x64xf32>
    %11 = arith.addf %8, %10 : vector<128x64xf32>
    %cst_12 = arith.constant 0.000000e+00 : f32
    %12 = vector.broadcast %cst_12 : f32 to vector<128x64xf32>
    %13 = arith.maximumf %11, %12 : vector<128x64xf32>
    %c0_13 = arith.constant 0 : index
    %c0_14 = arith.constant 0 : index
    %14 = vector.load %arg6[%c0_13, %c0_14] : memref<64x32xf32, #tpu.memory_space<vmem>>, vector<64x32xf32>
    %cst_15 = arith.constant dense<0.000000e+00> : vector<128x32xf32>
    %15 = tpu.matmul %13, %14, %cst_15 {dimension_numbers = #tpu.dot_dimension_numbers<[1], [0], [0], [1], [0, 0, 1, 1], [], []>} : vector<128x64xf32>, vector<64x32xf32>, vector<128x32xf32> -> vector<128x32xf32>
    %c0_16 = arith.constant 0 : index
    %c0_17 = arith.constant 0 : index
    %16 = vector.load %arg7[%c0_16, %c0_17] : memref<1x32xf32, #tpu.memory_space<vmem>>, vector<1x32xf32>
    %17 = vector.broadcast %16 : vector<1x32xf32> to vector<128x32xf32>
    %18 = arith.addf %15, %17 : vector<128x32xf32>
    %19 = vector.shape_cast %18 : vector<128x32xf32> to vector<4x32x32xf32>
    %cst_18 = arith.constant dense<0xFF800000> : vector<32x32xf32>
    %20 = vector.multi_reduction <maximumf>, %19, %cst_18 [0] : vector<4x32x32xf32> to vector<32x32xf32>
    %21 = vector.shape_cast %20 : vector<32x32xf32> to vector<1x32x32xf32>
    %22 = vector.broadcast %21 : vector<1x32x32xf32> to vector<4x32x32xf32>
    %23 = arith.subf %19, %22 : vector<4x32x32xf32>
    %24 = math.exp %23 : vector<4x32x32xf32>
    %cst_19 = arith.constant dense<0.000000e+00> : vector<32x32xf32>
    %25 = vector.multi_reduction <add>, %24, %cst_19 [0] : vector<4x32x32xf32> to vector<32x32xf32>
    %cst_20 = arith.constant 1.000000e+00 : f32
    %26 = vector.broadcast %cst_20 : f32 to vector<32x32xf32>
    %27 = arith.divf %26, %25 : vector<32x32xf32>
    %28 = arith.mulf %24, %0 : vector<4x32x32xf32>
    %cst_21 = arith.constant dense<0.000000e+00> : vector<32x32xf32>
    %29 = vector.multi_reduction <add>, %28, %cst_21 [0] : vector<4x32x32xf32> to vector<32x32xf32>
    %30 = arith.mulf %29, %27 : vector<32x32xf32>
    %c0_22 = arith.constant 0 : index
    %c0_23 = arith.constant 0 : index
    %c0_24 = arith.constant 0 : index
    %31 = vector.load %arg8[%c0_22, %c0_23, %c0_24] : memref<2x32x32xf32, #tpu.memory_space<vmem>>, vector<1x32x32xf32>
    %32 = vector.shape_cast %31 : vector<1x32x32xf32> to vector<32x32xf32>
    %33 = vector.shape_cast %30 : vector<32x32xf32> to vector<1x32x32xf32>
    tpu.vector_store %arg8[%c0_22, %c0_23, %c0_24], %33 {strides = array<i32>} : memref<2x32x32xf32, #tpu.memory_space<vmem>>, vector<1x32x32xf32>,
    %34 = arith.mulf %24, %1 : vector<4x32x32xf32>
    %cst_25 = arith.constant dense<0.000000e+00> : vector<32x32xf32>
    %35 = vector.multi_reduction <add>, %34, %cst_25 [0] : vector<4x32x32xf32> to vector<32x32xf32>
    %36 = arith.mulf %35, %27 : vector<32x32xf32>
    %c1 = arith.constant 1 : index
    %c0_26 = arith.constant 0 : index
    %c0_27 = arith.constant 0 : index
    %37 = vector.load %arg8[%c1, %c0_26, %c0_27] : memref<2x32x32xf32, #tpu.memory_space<vmem>>, vector<1x32x32xf32>
    %38 = vector.shape_cast %37 : vector<1x32x32xf32> to vector<32x32xf32>
    %39 = vector.shape_cast %36 : vector<32x32xf32> to vector<1x32x32xf32>
    tpu.vector_store %arg8[%c1, %c0_26, %c0_27], %39 {strides = array<i32>} : memref<2x32x32xf32, #tpu.memory_space<vmem>>, vector<1x32x32xf32>,
    return
  }
  func.func @transform_0(%arg0: i32) -> (i32, i32, i32) {
    %c0_i32 = arith.constant 0 : i32
    %c0_i32_0 = arith.constant 0 : i32
    %c0_i32_1 = arith.constant 0 : i32
    return %c0_i32, %arg0, %c0_i32_0 : i32, i32, i32
  }
  func.func @transform_1(%arg0: i32) -> (i32, i32, i32) {
    %c0_i32 = arith.constant 0 : i32
    %c0_i32_0 = arith.constant 0 : i32
    %c0_i32_1 = arith.constant 0 : i32
    return %c0_i32, %arg0, %c0_i32_0 : i32, i32, i32
  }
  func.func @transform_2(%arg0: i32) -> (i32, i32) {
    %c0_i32 = arith.constant 0 : i32
    %c0_i32_0 = arith.constant 0 : i32
    %c0_i32_1 = arith.constant 0 : i32
    return %c0_i32, %c0_i32_0 : i32, i32
  }
  func.func @transform_3(%arg0: i32) -> (i32, i32) {
    %c0_i32 = arith.constant 0 : i32
    %c0_i32_0 = arith.constant 0 : i32
    %c0_i32_1 = arith.constant 0 : i32
    return %c0_i32, %c0_i32_0 : i32, i32
  }
  func.func @transform_4(%arg0: i32) -> (i32, i32) {
    %c0_i32 = arith.constant 0 : i32
    %c0_i32_0 = arith.constant 0 : i32
    %c0_i32_1 = arith.constant 0 : i32
    return %c0_i32, %c0_i32_0 : i32, i32
  }
  func.func @transform_5(%arg0: i32) -> (i32, i32) {
    %c0_i32 = arith.constant 0 : i32
    %c0_i32_0 = arith.constant 0 : i32
    %c0_i32_1 = arith.constant 0 : i32
    return %c0_i32, %c0_i32_0 : i32, i32
  }
  func.func @transform_6(%arg0: i32) -> (i32, i32) {
    %c0_i32 = arith.constant 0 : i32
    %c0_i32_0 = arith.constant 0 : i32
    %c0_i32_1 = arith.constant 0 : i32
    return %c0_i32, %c0_i32_0 : i32, i32
  }
  func.func @transform_7(%arg0: i32) -> (i32, i32, i32) {
    %c0_i32 = arith.constant 0 : i32
    %c0_i32_0 = arith.constant 0 : i32
    %c0_i32_1 = arith.constant 0 : i32
    return %c0_i32, %arg0, %c0_i32_0 : i32, i32, i32
  }
}

</mosaic_0001>

<bundles_post_ra>
// kernel: tpu_custom_call.1
= control target key start
LH: loop header
LB: loop body
LE: loop exit
PB: predicated region body
PF: predicated region fallthrough
CT: control target
= control target key end

     0   :  { %12 = vsyncpa [#allocation3], 0  ;;  %s1774_s0 = inlined_call_operand.hbm [shape: f32[4,32,32], index: 0, kind: input, shape index: {}]   ;;  %s1775_s1 = inlined_call_operand.hbm [shape: f32[4,32,32], index: 1, kind: input, shape index: {}]   ;;  %s1776_s2 = inlined_call_operand.vmem [shape: f32[32,64], index: 2, kind: input, shape index: {}]   ;;  %s1777_s3 = inlined_call_operand.vmem [shape: f32[32,64], index: 3, kind: input, shape index: {}]   ;;  %s1778_s4 = inlined_call_operand.vmem [shape: f32[1,64], index: 4, kind: input, shape index: {}]   ;;  %s1779_s5 = inlined_call_operand.vmem [shape: f32[64,32], index: 5, kind: input, shape index: {}]   ;;  %s1780_s6 = inlined_call_operand.vmem [shape: f32[1,32], index: 6, kind: input, shape index: {}]   ;;  %s1781_s7 = inlined_call_operand.hbm [shape: f32[2,32,32], index: 7, kind: output, shape index: {}]  }
   0x1   :  { %13 = vsyncpa [#allocation6], 0 }
   0x2   :  { %14 = vsyncpa [#allocation4], 0  ;;  %s1302_s24 = smov [#allocation2]  }
   0x3   :  { %s20_s25 = sshll.u32 %s1302_s24, 4  ;;  %s21_s25 = int_to_ptr.vmem [resolvable:$true] %s20_s25 }
   0x4   :  { %s1244_s26 = scalar_lea.vmem %s21_s25, 2048  ;;  %p1249_p1 = scmp.lt.s32.totalorder %s21_s25, %s21_s25 }
   0x5   :  { %p1245_p0 = scmp.ne.s32.totalorder %s21_s25, %s1244_s26  ;;  %p1250_p2 = scmp.lt.s32.totalorder %s1244_s26, %s1244_s26 }
   0x7   :  { %p1251_p3 = por %p1250_p2, %p1249_p1 }
   0x9   :  { %p1252_p4 = pnand %p1251_p3, %p1245_p0 }
   0xb   :  { %1255 = shalt.err (!%p1252_p4)
}
   0xc   :  { %s1303_s27 = smov 128   ;;  %s1304_s28 = smov 8  }
   0xd   :  { %26 = dma.hbm_to_vmem [thread:$0]  %s1774_s0, 2048, %s21_s25, [#allocation3], %s1303_s27, %s1303_s27, %s1304_s28  }
   0xe   :  { %s1305_s8 = smov [#allocation5]  }
   0xf   :  { %s32_s9 = sshll.u32 %s1305_s8, 4  ;;  %s33_s9 = int_to_ptr.vmem [resolvable:$true] %s32_s9 }
  0x10   :  { %s1264_s10 = scalar_lea.vmem %s33_s9, 2048  ;;  %p1269_p6 = scmp.lt.s32.totalorder %s33_s9, %s33_s9 }
  0x11   :  { %p1265_p5 = scmp.ne.s32.totalorder %s33_s9, %s1264_s10  ;;  %p1270_p7 = scmp.lt.s32.totalorder %s1264_s10, %s1264_s10 }
  0x13   :  { %p1271_p8 = por %p1270_p7, %p1269_p6 }
  0x15   :  { %p1272_p9 = pnand %p1271_p8, %p1265_p5 }
  0x17   :  { %1275 = shalt.err (!%p1272_p9)
}
  0x18   :  { %38 = dma.hbm_to_vmem [thread:$0]  %s1775_s1, 2048, %s33_s9, [#allocation6], %s1303_s27, %s1303_s27, %s1304_s28  }
  0x19   :  { %1296 = dma.done.wait [#allocation3], 2048  }
  0x1a   :  { %1297 = vsyncadd [#allocation3], 4294965248 }
  0x1b   :  { %1298 = dma.done.wait [#allocation6], 2048  }
  0x1c   :  { %1299 = vsyncadd [#allocation6], 4294965248  ;;  %vm95_vm0 = vcmask 261120   ;;  %v94_v0 = vld [vmem:[%s1777_s3 + $0x18] sm:$0xff]  ;;  %v93_v1 = vld [vmem:[%s1777_s3 + $0x10] sm:$0xff]  ;;  %vm536_vm1 = vcmask 523264  }
  0x1d   :  { %1183 = vmatprep.subr.mxu1 %v94_v0  ;;  %v1365_v2 = vld [vmem:[#allocation5 + $0x40] sm:$0xff]  ;;  %1079 = vmatprep.subr.mxu0 %v94_v0  ;;  %v92_v3 = vld [vmem:[%s1777_s3 + $0x8] sm:$0xff]  ;;  %v90_v6 = vld [vmem:[%s1776_s2 + $0x18] sm:$0xff] }
  0x1e   :  { %1187 = vmatpush3.msra.mxu1 %v94_v0  ;;  %1099 = vmatprep.mubr.msk.f32.mxu1 %vm95_vm0, %v1365_v2  ;;  %v91_v4 = vld [vmem:[%s1777_s3] sm:$0xff]  ;;  %v1375_v5 = vld [vmem:[#allocation5 + $0x48] sm:$0xff]  ;;  %v1380_v7 = vld [vmem:[#allocation5 + $0x50] sm:$0xff] }
  0x1f   :  { %1184 = vmatprep.subr.mxu1 %v93_v1  ;;  %1080 = vmatpush3.msra.mxu0 %v94_v0  ;;  %1790 = vst [vmem:[#allocation11_spill] sm:$0xff] %v1380_v7  ;;  %v89_v8 = vld [vmem:[%s1776_s2 + $0x10] sm:$0xff]  ;;  %v1387_v9 = vld [vmem:[#allocation5] sm:$0xff]  ;;  %v1391_v10 = vld [vmem:[#allocation5 + $0x58] sm:$0xff] }
  0x20   :  { %1188 = vmatpush3.msra.mxu1 %v93_v1  ;;  %1081 = vmatprep.subr.mxu0 %v93_v1  ;;  %1791 = vst [vmem:[#allocation12_spill] sm:$0xff] %v1391_v10  ;;  %v88_v11 = vld [vmem:[%s1776_s2 + $0x8] sm:$0xff]  ;;  %v1396_v12 = vld [vmem:[#allocation5 + $0x60] sm:$0xff]  ;;  %v1407_v15 = vld [vmem:[#allocation5 + $0x10] sm:$0xff] }
  0x21   :  { %1185 = vmatprep.subr.mxu1 %v92_v3  ;;  %1082 = vmatpush3.msra.mxu0 %v93_v1  ;;  %1792 = vst [vmem:[#allocation13_spill] sm:$0xff] %v1396_v12  ;;  %v87_v13 = vld [vmem:[%s1776_s2] sm:$0xff]  ;;  %v1403_v14 = vld [vmem:[#allocation5 + $0x8] sm:$0xff]  ;;  %v1413_v17 = vld [vmem:[#allocation5 + $0x70] sm:$0xff] }
  0x22   :  { %1189 = vmatpush3.msra.mxu1 %v92_v3  ;;  %1083 = vmatprep.subr.mxu0 %v92_v3  ;;  %v1411_v16 = vld [vmem:[#allocation5 + $0x68] sm:$0xff]  ;;  %1794 = vst [vmem:[#allocation15_spill] sm:$0xff] %v1413_v17  ;;  %v1419_v18 = vld [vmem:[#allocation5 + $0x18] sm:$0xff]  ;;  %v1423_v19 = vld [vmem:[#allocation5 + $0x20] sm:$0xff] }
  0x23   :  { %1186 = vmatprep.subr.mxu1 %v91_v4  ;;  %1084 = vmatpush3.msra.mxu0 %v92_v3  ;;  %1793 = vst [vmem:[#allocation14_spill] sm:$0xff] %v1411_v16  ;;  %v1427_v20 = vld [vmem:[#allocation5 + $0x78] sm:$0xff]  ;;  %v1429_v21 = vld [vmem:[#allocation2] sm:$0xff]  ;;  %v1435_v22 = vld [vmem:[#allocation5 + $0x28] sm:$0xff] }
  0x24   :  { %1190 = vmatpush3.msra.mxu1 %v91_v4  ;;  %1085 = vmatprep.subr.mxu0 %v91_v4  ;;  %1795 = vst [vmem:[#allocation16_spill] sm:$0xff] %v1427_v20  ;;  %v1439_v23 = vld [vmem:[#allocation5 + $0x30] sm:$0xff]  ;;  %v1443_v24 = vld [vmem:[#allocation2 + $0x8] sm:$0xff]  ;;  %v1451_v26 = vld [vmem:[#allocation5 + $0x38] sm:$0xff] }
  0x25   :  { %1100 = vmatmul.mubr.msk.f32.vlgmr.msra.gmra.mxu1 %vm95_vm0, %v1375_v5  ;;  %1111 = vmatprep.subr.mxu1 %v90_v6  ;;  %1796 = vst [vmem:[#allocation17_spill] sm:$0xff] %v1439_v23  ;;  %v1445_v25 = vld [vmem:[#allocation2 + $0x10] sm:$0xff]  ;;  %1797 = vst [vmem:[#allocation18_spill] sm:$0xff] %v1451_v26  ;;  %v1457_v27 = vld [vmem:[#allocation2 + $0x18] sm:$0xff] }
  0x26   :  { %1112 = vmatpush3.msra.mxu1 %v90_v6  ;;  %1102 = vmatprep.mubr.msk.f32.mxu1 %vm95_vm0, %v1380_v7  ;;  %v1459_v28 = vld [vmem:[#allocation2 + $0x20] sm:$0xff]  ;;  %v1467_v29 = vld [vmem:[#allocation2 + $0x28] sm:$0xff]  ;;  %v1469_v30 = vld [vmem:[#allocation2 + $0x30] sm:$0xff] }
  0x27   :  { %1113 = vmatprep.subr.mxu1 %v89_v8  ;;  %1086 = vmatpush3.msra.mxu0 %v91_v4  ;;  %v1475_v31 = vld [vmem:[#allocation2 + $0x38] sm:$0xff]  ;;  %v1477_v32 = vld [vmem:[#allocation2 + $0x40] sm:$0xff]  ;;  %v1483_v33 = vld [vmem:[#allocation2 + $0x48] sm:$0xff] }
  0x28   :  { %1114 = vmatpush3.msra.mxu1 %v89_v8  ;;  %1087 = vmatprep.mubr.msk.f32.mxu0 %vm95_vm0, %v1387_v9  ;;  %v1485_v34 = vld [vmem:[#allocation2 + $0x50] sm:$0xff]  ;;  %v1491_v35 = vld [vmem:[#allocation2 + $0x58] sm:$0xff]  ;;  %v1493_v36 = vld [vmem:[#allocation2 + $0x60] sm:$0xff] }
  0x29   :  { %1103 = vmatmul.mubr.msk.f32.gmra.mxu1 %vm95_vm0, %v1391_v10  ;;  %1115 = vmatprep.subr.mxu1 %v88_v11  ;;  %v1499_v37 = vld [vmem:[#allocation2 + $0x68] sm:$0xff]  ;;  %v1501_v38 = vld [vmem:[#allocation2 + $0x70] sm:$0xff]  ;;  %v1507_v39 = vld [vmem:[#allocation2 + $0x78] sm:$0xff] }
  0x2a   :  { %1105 = vmatprep.mubr.msk.f32.mxu1 %vm95_vm0, %v1396_v12  ;;  %1116 = vmatpush3.msra.mxu1 %v88_v11  ;;  %v528_v40 = vld [vmem:[%s1779_s5 + $0x38] sm:$0xff]  ;;  %v527_v41 = vld [vmem:[%s1779_s5 + $0x30] sm:$0xff]  ;;  %v526_v42 = vld [vmem:[%s1779_s5 + $0x28] sm:$0xff] }
  0x2b   :  { %1117 = vmatprep.subr.mxu1 %v87_v13  ;;  %1088 = vmatmul.mubr.msk.f32.vlgmr.msra.gmra.mxu0 %vm95_vm0, %v1403_v14  ;;  %v525_v43 = vld [vmem:[%s1779_s5 + $0x20] sm:$0xff]  ;;  %v524_v44 = vld [vmem:[%s1779_s5 + $0x18] sm:$0xff]  ;;  %v523_v45 = vld [vmem:[%s1779_s5 + $0x10] sm:$0xff] }
  0x2c   :  { %1118 = vmatpush3.msra.mxu1 %v87_v13  ;;  %1090 = vmatprep.mubr.msk.f32.mxu0 %vm95_vm0, %v1407_v15  ;;  %v522_v46 = vld [vmem:[%s1779_s5 + $0x8] sm:$0xff]  ;;  %v521_v47 = vld [vmem:[%s1779_s5] sm:$0xff] }
  0x2d   :  { %1106 = vmatmul.mubr.msk.f32.gmra.mxu1 %vm95_vm0, %v1411_v16  ;;  %1143 = vmatprep.subr.mxu0 %v528_v40  ;;  %v1548_v62 = vld [vmem:[%s1778_s4] ss:$0 sm:$0xff] }
  0x2e   :  { %1108 = vmatprep.mubr.msk.f32.mxu1 %vm95_vm0, %v1413_v17  ;;  %1144 = vmatpush3.msra.mxu0 %v528_v40 }
  0x2f   :  { %1091 = vmatmul.mubr.msk.f32.gmra.mxu0 %vm95_vm0, %v1419_v18  ;;  %1145 = vmatprep.subr.mxu0 %v527_v41 }
  0x30   :  { %1093 = vmatprep.mubr.msk.f32.mxu0 %vm95_vm0, %v1423_v19  ;;  %1146 = vmatpush3.msra.mxu0 %v527_v41 }
  0x31   :  { %1109 = vmatmul.mubr.msk.f32.gmra.mxu1 %vm95_vm0, %v1427_v20  ;;  %1147 = vmatprep.subr.mxu0 %v526_v42 }
  0x32   :  { %1119 = vmatprep.mubr.msk.f32.mxu1 %vm95_vm0, %v1429_v21  ;;  %1148 = vmatpush3.msra.mxu0 %v526_v42 }
  0x33   :  { %1094 = vmatmul.mubr.msk.f32.gmra.mxu0 %vm95_vm0, %v1435_v22  ;;  %1149 = vmatprep.subr.mxu0 %v525_v43 }
  0x34   :  { %1096 = vmatprep.mubr.msk.f32.mxu0 %vm95_vm0, %v1439_v23  ;;  %1150 = vmatpush3.msra.mxu0 %v525_v43 }
  0x35   :  { %1120 = vmatmul.mubr.msk.f32.vlgmr.msra.gmra.mxu1 %vm95_vm0, %v1443_v24  ;;  %1151 = vmatprep.subr.mxu0 %v524_v44 }
  0x36   :  { %1122 = vmatprep.mubr.msk.f32.mxu1 %vm95_vm0, %v1445_v25  ;;  %1152 = vmatpush3.msra.mxu0 %v524_v44 }
  0x37   :  { %1097 = vmatmul.mubr.msk.f32.gmra.mxu0 %vm95_vm0, %v1451_v26  ;;  %1153 = vmatprep.subr.mxu0 %v523_v45 }
  0x38   :  { %1154 = vmatpush3.msra.mxu0 %v523_v45 }
  0x39   :  { %1123 = vmatmul.mubr.msk.f32.gmra.mxu1 %vm95_vm0, %v1457_v27  ;;  %1155 = vmatprep.subr.mxu0 %v522_v46 }
  0x3a   :  { %1125 = vmatprep.mubr.msk.f32.mxu1 %vm95_vm0, %v1459_v28  ;;  %1156 = vmatpush3.msra.mxu0 %v522_v46 }
  0x3b   :  { %1157 = vmatprep.subr.mxu0 %v521_v47 }
  0x3c   :  { %1158 = vmatpush3.msra.mxu0 %v521_v47 }
  0x3d   :  { %1126 = vmatmul.mubr.msk.f32.gmra.mxu1 %vm95_vm0, %v1467_v29 }
  0x3e   :  { %1128 = vmatprep.mubr.msk.f32.mxu1 %vm95_vm0, %v1469_v30 }
  0x41   :  { %1129 = vmatmul.mubr.msk.f32.gmra.mxu1 %vm95_vm0, %v1475_v31 }
  0x42   :  { %1131 = vmatprep.mubr.msk.f32.mxu1 %vm95_vm0, %v1477_v32 }
  0x45   :  { %1132 = vmatmul.mubr.msk.f32.gmra.mxu1 %vm95_vm0, %v1483_v33 }
  0x46   :  { %1134 = vmatprep.mubr.msk.f32.mxu1 %vm95_vm0, %v1485_v34 }
  0x49   :  { %1135 = vmatmul.mubr.msk.f32.gmra.mxu1 %vm95_vm0, %v1491_v35 }
  0x4a   :  { %1137 = vmatprep.mubr.msk.f32.mxu1 %vm95_vm0, %v1493_v36 }
  0x4d   :  { %1138 = vmatmul.mubr.msk.f32.gmra.mxu1 %vm95_vm0, %v1499_v37 }
  0x4e   :  { %1140 = vmatprep.mubr.msk.f32.mxu1 %vm95_vm0, %v1501_v38 }
  0x51   :  { %1141 = vmatmul.mubr.msk.f32.gmra.mxu1 %vm95_vm0, %v1507_v39 }
  0xe5   :  { %v1101_v48 = vpop.f32.mrf.mxu1 }
  0xe7   :  { %v250_v49 = vpop.f32.mrf.mxu1 }
  0xe9   :  { %v1104_v50 = vpop.f32.mrf.mxu1 }
  0xeb   :  { %v1535_v51 = vpop.f32.mrf.mxu1  ;;  %v1089_v52 = vpop.f32.mrf.mxu0 }
  0xed   :  { %v1537_v53 = vpop.f32.mrf.mxu1  ;;  %v210_v54 = vpop.f32.mrf.mxu0 }
  0xef   :  { %v1539_v55 = vpop.f32.mrf.mxu1  ;;  %v1092_v56 = vpop.f32.mrf.mxu0 }
  0xf1   :  { %v1541_v57 = vpop.f32.mrf.mxu1  ;;  %v220_v59 = vpop.f32.mrf.mxu0 }
  0xf3   :  { %v1543_v58 = vpop.f32.mrf.mxu1  ;;  %v1095_v0 = vpop.f32.mrf.mxu0 }
  0xf5   :  { %v1121_v60 = vpop.f32.mrf.mxu1  ;;  %v230_v13 = vpop.f32.mrf.mxu0 }
  0xf6   :  { %v409_v61 = vadd.f32 %v1121_v60, %v1089_v52 }
  0xf7   :  { %v403_v63 = vpop.f32.mrf.mxu1  ;;  %v1098_v52 = vpop.f32.mrf.mxu0 }
  0xf8   :  { %v404_v1 = vadd.f32 %v403_v63, %v210_v54  ;;  %v490_v3 = vadd.f32 %v1548_v62, %v409_v61 }
  0xf9   :  { %v1124_v4 = vpop.f32.mrf.mxu1 }
  0xfa   :  { %v489_v6 = vadd.f32 %v1548_v62, %v404_v1  ;;  %v419_v8 = vadd.f32 %v1124_v4, %v1092_v56  ;;  %v506_v42 = vmax.f32 %v490_v3, 0.0  ;;  %v240_v3 = vpop.f32.mrf.mxu0 }
  0xfb   :  { %v413_v11 = vpop.f32.mrf.mxu1 }
  0xfc   :  { %v505_v40 = vmax.f32 %v489_v6, 0.0  ;;  %v414_v41 = vadd.f32 %v413_v11, %v220_v59  ;;  %v492_v43 = vadd.f32 %v1548_v62, %v419_v8 }
  0xfd   :  { %v1127_v44 = vpop.f32.mrf.mxu1 }
  0xfe   :  { %v491_v45 = vadd.f32 %v1548_v62, %v414_v41  ;;  %v429_v46 = vadd.f32 %v1127_v44, %v1095_v0  ;;  %1159 = vmatprep.mubr.msk.f32.mxu0 %vm536_vm1, %v505_v40  ;;  %v508_v60 = vmax.f32 %v492_v43, 0.0 }
  0xff   :  { %v423_v47 = vpop.f32.mrf.mxu1  ;;  %1160 = vmatmul.mubr.msk.f32.vlgmr.msra.gmra.mxu0 %vm536_vm1, %v506_v42 }
 0x100   :  { %v507_v54 = vmax.f32 %v491_v45, 0.0  ;;  %v424_v56 = vadd.f32 %v423_v47, %v230_v13  ;;  %v494_v61 = vadd.f32 %v1548_v62, %v429_v46 }
 0x101   :  { %v1130_v63 = vpop.f32.mrf.mxu1 }
 0x102   :  { %v493_v59 = vadd.f32 %v1548_v62, %v424_v56  ;;  %v439_v1 = vadd.f32 %v1130_v63, %v1098_v52  ;;  %1162 = vmatprep.mubr.msk.f32.mxu0 %vm536_vm1, %v507_v54  ;;  %v510_v8 = vmax.f32 %v494_v61, 0.0 }
 0x103   :  { %v433_v4 = vpop.f32.mrf.mxu1  ;;  %1163 = vmatmul.mubr.msk.f32.gmra.mxu0 %vm536_vm1, %v508_v60 }
 0x104   :  { %v509_v0 = vmax.f32 %v493_v59, 0.0  ;;  %v434_v6 = vadd.f32 %v433_v4, %v240_v3  ;;  %v496_v11 = vadd.f32 %v1548_v62, %v439_v1 }
 0x105   :  { %v1133_v40 = vpop.f32.mrf.mxu1 }
 0x106   :  { %v495_v13 = vadd.f32 %v1548_v62, %v434_v6  ;;  %v449_v41 = vadd.f32 %v1133_v40, %v1101_v48  ;;  %1165 = vmatprep.mubr.msk.f32.mxu0 %vm536_vm1, %v509_v0  ;;  %v512_v45 = vmax.f32 %v496_v11, 0.0 }
 0x107   :  { %v443_v42 = vpop.f32.mrf.mxu1  ;;  %1166 = vmatmul.mubr.msk.f32.gmra.mxu0 %vm536_vm1, %v510_v8 }
 0x108   :  { %v511_v43 = vmax.f32 %v495_v13, 0.0  ;;  %v444_v44 = vadd.f32 %v443_v42, %v250_v49  ;;  %v498_v46 = vadd.f32 %v1548_v62, %v449_v41 }
 0x109   :  { %v1136_v47 = vpop.f32.mrf.mxu1 }
 0x10a   :  { %v497_v52 = vadd.f32 %v1548_v62, %v444_v44  ;;  %v459_v54 = vadd.f32 %v1136_v47, %v1104_v50  ;;  %1168 = vmatprep.mubr.msk.f32.mxu0 %vm536_vm1, %v511_v43  ;;  %v514_v61 = vmax.f32 %v498_v46, 0.0 }
 0x10b   :  { %v453_v56 = vpop.f32.mrf.mxu1  ;;  %1169 = vmatmul.mubr.msk.f32.gmra.mxu0 %vm536_vm1, %v512_v45 }
 0x10c   :  { %v513_v48 = vmax.f32 %v497_v52, 0.0  ;;  %v454_v60 = vadd.f32 %v453_v56, %v1535_v51  ;;  %v500_v63 = vadd.f32 %v1548_v62, %v459_v54 }
 0x10d   :  { %v1139_v59 = vpop.f32.mrf.mxu1 }
 0x10e   :  { %v499_v49 = vadd.f32 %v1548_v62, %v454_v60  ;;  %v469_v1 = vadd.f32 %v1139_v59, %v1537_v53  ;;  %1171 = vmatprep.mubr.msk.f32.mxu0 %vm536_vm1, %v513_v48  ;;  %v516_v0 = vmax.f32 %v500_v63, 0.0 }
 0x10f   :  { %v463_v3 = vpop.f32.mrf.mxu1  ;;  %1172 = vmatmul.mubr.msk.f32.gmra.mxu0 %vm536_vm1, %v514_v61 }
 0x110   :  { %v515_v50 = vmax.f32 %v499_v49, 0.0  ;;  %v464_v4 = vadd.f32 %v463_v3, %v1539_v55  ;;  %v502_v6 = vadd.f32 %v1548_v62, %v469_v1 }
 0x111   :  { %v1142_v51 = vpop.f32.mrf.mxu1 }
 0x112   :  { %v501_v8 = vadd.f32 %v1548_v62, %v464_v4  ;;  %v479_v11 = vadd.f32 %v1142_v51, %v1541_v57  ;;  %1174 = vmatprep.mubr.msk.f32.mxu0 %vm536_vm1, %v515_v50  ;;  %v518_v41 = vmax.f32 %v502_v6, 0.0 }
 0x113   :  { %v473_v40 = vpop.f32.mrf.mxu1  ;;  %1175 = vmatmul.mubr.msk.f32.gmra.mxu0 %vm536_vm1, %v516_v0 }
 0x114   :  { %v517_v53 = vmax.f32 %v501_v8, 0.0  ;;  %v474_v13 = vadd.f32 %v473_v40, %v1543_v58  ;;  %v504_v42 = vadd.f32 %v1548_v62, %v479_v11 }
 0x116   :  { %v503_v55 = vadd.f32 %v1548_v62, %v474_v13  ;;  %1177 = vmatprep.mubr.msk.f32.mxu0 %vm536_vm1, %v517_v53  ;;  %v520_v44 = vmax.f32 %v504_v42, 0.0  ;;  %v998_v62 = vld [vmem:[%s1780_s6] ss:$0 sm:$0xff]  ;;  %s1306_s6 = smov [#allocation7]  }
 0x117   :  { %1178 = vmatmul.mubr.msk.f32.gmra.mxu0 %vm536_vm1, %v518_v41  ;;  %s952_s20 = sshll.u32 %s1306_s6, 4  ;;  %s953_s20 = int_to_ptr.vmem [resolvable:$true] %s952_s20 }
 0x118   :  { %v519_v43 = vmax.f32 %v503_v55, 0.0  ;;  %s1276_s21 = scalar_lea.vmem %s953_s20, 1024  ;;  %p1281_p11 = scmp.lt.s32.totalorder %s953_s20, %s953_s20 }
 0x119   :  { %p1277_p10 = scmp.ne.s32.totalorder %s953_s20, %s1276_s21  ;;  %p1282_p12 = scmp.lt.s32.totalorder %s1276_s21, %s1276_s21 }
 0x11a   :  { %1180 = vmatprep.mubr.msk.f32.mxu0 %vm536_vm1, %v519_v43 }
 0x11b   :  { %1181 = vmatmul.mubr.msk.f32.gmra.mxu0 %vm536_vm1, %v520_v44  ;;  %p1283_p13 = por %p1282_p12, %p1281_p11 }
 0x11d   :  { %p1284_p0 = pnand %p1283_p13, %p1277_p10 }
 0x1bf   :  { %v1161_v57 = vpop.f32.mrf.mxu0 }
 0x1c0   :  { %v657_v63 = vadd.f32 %v1161_v57, %v998_v62 }
 0x1c1   :  { %v651_v45 = vpop.f32.mrf.mxu0 }
 0x1c2   :  { %v652_v50 = vadd.f32 %v998_v62, %v651_v45  ;;  %v737_v11 = vsel %vm95_vm0, %v657_v63, -inf }
 0x1c3   :  { %v1164_v46 = vpop.f32.mrf.mxu0 }
 0x1c4   :  { %v1592_v4 = vadd.f32 %v1164_v46, %v998_v62  ;;  %v730_v44 = vsel %vm95_vm0, %v652_v50, -inf }
 0x1c5   :  { %v661_v47 = vpop.f32.mrf.mxu0 }
 0x1c6   :  { %v1600_v13 = vadd.f32 %v998_v62, %v661_v47  ;;  %v751_v57 = vsel %vm95_vm0, %v1592_v4, -inf }
 0x1c7   :  { %v1167_v58 = vpop.f32.mrf.mxu0 }
 0x1c8   :  { %v677_v60 = vadd.f32 %v1167_v58, %v998_v62 }
 0x1c9   :  { %v671_v52 = vpop.f32.mrf.mxu0 }
 0x1ca   :  { %v672_v59 = vadd.f32 %v998_v62, %v671_v52  ;;  %v738_v0 = vsel %vm95_vm0, %v677_v60, -inf }
 0x1cb   :  { %v1170_v54 = vpop.f32.mrf.mxu0  ;;  %v739_v41 = vmax.f32 %v737_v11, %v738_v0  ;;  %v744_v0 = vsel %vm95_vm0, %v1600_v13, -inf }
 0x1cc   :  { %v1590_v1 = vadd.f32 %v1170_v54, %v998_v62  ;;  %v731_v40 = vsel %vm95_vm0, %v672_v59, -inf }
 0x1cd   :  { %v681_v56 = vpop.f32.mrf.mxu0  ;;  %v732_v46 = vmax.f32 %v730_v44, %v731_v40 }
 0x1ce   :  { %v752_v42 = vsel %vm95_vm0, %v1590_v1, -inf  ;;  %v1604_v55 = vadd.f32 %v998_v62, %v681_v56 }
 0x1cf   :  { %v1173_v48 = vpop.f32.mrf.mxu0 }
 0x1d0   :  { %v697_v49 = vadd.f32 %v1173_v48, %v998_v62  ;;  %v753_v48 = vmax.f32 %v751_v57, %v752_v42  ;;  %v745_v11 = vsel %vm95_vm0, %v1604_v55, -inf }
 0x1d1   :  { %v691_v61 = vpop.f32.mrf.mxu0 }
 0x1d2   :  { %v692_v6 = vadd.f32 %v998_v62, %v691_v61  ;;  %v740_v53 = vsel %vm95_vm0, %v697_v49, -inf }
 0x1d3   :  { %v1176_v3 = vpop.f32.mrf.mxu0  ;;  %v741_v58 = vmax.f32 %v739_v41, %v740_v53 }
 0x1d4   :  { %v1595_v51 = vadd.f32 %v1176_v3, %v998_v62  ;;  %v733_v52 = vsel %vm95_vm0, %v692_v6, -inf }
 0x1d5   :  { %v701_v8 = vpop.f32.mrf.mxu0  ;;  %v734_v53 = vmax.f32 %v732_v46, %v733_v52 }
 0x1d6   :  { %v754_v47 = vsel %vm95_vm0, %v1595_v51, -inf  ;;  %v702_v61 = vadd.f32 %v998_v62, %v701_v8 }
 0x1d7   :  { %v1179_v43 = vpop.f32.mrf.mxu0  ;;  %v755_v41 = vmax.f32 %v753_v48, %v754_v47 }
 0x1d8   :  { %v717_v45 = vadd.f32 %v1179_v43, %v998_v62 }
 0x1d9   :  { %v711_v54 = vpop.f32.mrf.mxu0 }
 0x1da   :  { %v742_v56 = vsel %vm95_vm0, %v717_v45, -inf  ;;  %v712_v3 = vadd.f32 %v998_v62, %v711_v54  ;;  %v747_v54 = vsel %vm95_vm0, %v702_v61, -inf }
 0x1db   :  { %v743_v43 = vmax.f32 %v741_v58, %v742_v56  ;;  %v1182_v40 = vpop.f32.mrf.mxu0 }
 0x1dc   :  { %v735_v44 = vsel %vm95_vm0, %v712_v3, -inf  ;;  %v727_v20 = vadd.f32 %v1182_v40, %v998_v62  ;;  %v746_v40 = vmax.f32 %v744_v0, %v745_v11 }
 0x1dd   :  { %v759_v17 = vsub.f32 %v657_v63, %v743_v43  ;;  %v763_v16 = vsub.f32 %v677_v60, %v743_v43  ;;  %v767_v42 = vsub.f32 %v697_v49, %v743_v43  ;;  %v771_v8 = vsub.f32 %v717_v45, %v743_v43  ;;  %v721_v57 = vpop.f32.mrf.mxu0 }
 0x1de   :  { %v736_v12 = vmax.f32 %v734_v53, %v735_v44  ;;  %v756_v10 = vsel %vm95_vm0, %v727_v20, -inf  ;;  %v722_v7 = vadd.f32 %v998_v62, %v721_v57  ;;  %v748_v53 = vmax.f32 %v746_v40, %v747_v54 }
 0x1df   :  { %v776_v26 = vmul.f32 1.442695, %v759_v17  ;;  %v784_v23 = vmul.f32 1.442695, %v763_v16  ;;  %v792_v58 = vmul.f32 1.442695, %v767_v42  ;;  %v757_v56 = vmax.f32 %v755_v41, %v756_v10 }
 0x1e0   :  { %v800_v46 = vmul.f32 1.442695, %v771_v8  ;;  %v758_v52 = vsub.f32 %v652_v50, %v736_v12  ;;  %v762_v47 = vsub.f32 %v672_v59, %v736_v12  ;;  %v766_v48 = vsub.f32 %v692_v6, %v736_v12 }
 0x1e1   :  { %1196 = vpow2.f32 %v776_v26  ;;  %v770_v60 = vsub.f32 %v712_v3, %v736_v12  ;;  %v761_v63 = vsub.f32 %v1592_v4, %v757_v56  ;;  %v765_v43 = vsub.f32 %v1590_v1, %v757_v56 }
 0x1e2   :  { %1198 = vpow2.f32 %v784_v23  ;;  %v774_v49 = vmul.f32 1.442695, %v758_v52  ;;  %v782_v45 = vmul.f32 1.442695, %v762_v47  ;;  %v790_v17 = vmul.f32 1.442695, %v766_v48 }
 0x1e3   :  { %1200 = vpow2.f32 %v792_v58  ;;  %v769_v16 = vsub.f32 %v1595_v51, %v757_v56  ;;  %v798_v10 = vmul.f32 1.442695, %v770_v60  ;;  %v773_v62 = vsub.f32 %v727_v20, %v757_v56 }
 0x1e4   :  { %1202 = vpow2.f32 %v800_v46  ;;  %v749_v59 = vsel %vm95_vm0, %v722_v7, -inf  ;;  %v780_v26 = vmul.f32 1.442695, %v761_v63  ;;  %v788_v50 = vmul.f32 1.442695, %v765_v43 }
 0x1e5   :  { %1204 = vpow2.f32 %v774_v49  ;;  %v750_v12 = vmax.f32 %v748_v53, %v749_v59  ;;  %v796_v23 = vmul.f32 1.442695, %v769_v16  ;;  %v804_v3 = vmul.f32 1.442695, %v773_v62 }
 0x1e6   :  { %1206 = vpow2.f32 %v782_v45 }
 0x1e7   :  { %1208 = vpow2.f32 %v790_v17  ;;  %v760_v4 = vsub.f32 %v1600_v13, %v750_v12  ;;  %v764_v1 = vsub.f32 %v1604_v55, %v750_v12  ;;  %v768_v6 = vsub.f32 %v702_v61, %v750_v12 }
 0x1e8   :  { %1210 = vpow2.f32 %v798_v10  ;;  %v772_v51 = vsub.f32 %v722_v7, %v750_v12 }
 0x1e9   :  { %1212 = vpow2.f32 %v780_v26  ;;  %v778_v0 = vmul.f32 1.442695, %v760_v4  ;;  %v786_v20 = vmul.f32 1.442695, %v764_v1  ;;  %v794_v11 = vmul.f32 1.442695, %v768_v6 }
 0x1ea   :  { %1214 = vpow2.f32 %v788_v50  ;;  %v802_v41 = vmul.f32 1.442695, %v772_v51 }
 0x1eb   :  { %1216 = vpow2.f32 %v796_v23 }
 0x1ec   :  { %1218 = vpow2.f32 %v804_v3 }
 0x1ed   :  { %1220 = vpow2.f32 %v778_v0 }
 0x1ee   :  { %v1197_v44 = vpop.eup %1196  ;;  %1222 = vpow2.f32 %v786_v20 }
 0x1ef   :  { %v1199_v42 = vpop.eup %1198  ;;  %v813_v13 = vsel %vm95_vm0, %v1197_v44, 0.0  ;;  %1224 = vpow2.f32 %v794_v11  ;;  %v843_v55 = vmul.f32 %v1197_v44, %v1443_v24  ;;  %v1638_v47 = vmul.f32 %v1197_v44, %v1403_v14 }
 0x1f0   :  { %v1201_v61 = vpop.eup %1200  ;;  %v814_v7 = vsel %vm95_vm0, %v1199_v42, 0.0  ;;  %1226 = vpow2.f32 %v802_v41  ;;  %v847_v8 = vmul.f32 %v1199_v42, %v1467_v29  ;;  %v1660_v16 = vmul.f32 %v1199_v42, %v1435_v22 }
 0x1f1   :  { %v1630_v57 = vpop.eup %1202  ;;  %v815_v54 = vadd.f32 %v814_v7, %v813_v13  ;;  %v816_v56 = vsel %vm95_vm0, %v1201_v61, 0.0  ;;  %v851_v46 = vmul.f32 %v1201_v61, %v1483_v33  ;;  %v865_v52 = vsel %vm95_vm0, %v843_v55, 0.0 }
 0x1f2   :  { %v1632_v58 = vpop.eup %1204  ;;  %v818_v29 = vsel %vm95_vm0, %v1630_v57, 0.0  ;;  %v855_v49 = vmul.f32 %v1630_v57, %v1499_v37  ;;  %v866_v45 = vsel %vm95_vm0, %v847_v8, 0.0 }
 0x1f3   :  { %v1640_v24 = vpop.eup %1206  ;;  %v817_v48 = vadd.f32 %v816_v56, %v815_v54  ;;  %v806_v40 = vsel %vm95_vm0, %v1632_v58, 0.0  ;;  %v842_v60 = vmul.f32 %v1632_v58, %v1429_v21  ;;  %v1663_v21 = vmul.f32 %v1201_v61, %v1375_v5 }
 0x1f4   :  { %v1648_v63 = vpop.eup %1208  ;;  %v807_v33 = vsel %vm95_vm0, %v1640_v24, 0.0  ;;  %v846_v14 = vmul.f32 %v1640_v24, %v1459_v28  ;;  %v867_v12 = vadd.f32 %v866_v45, %v865_v52  ;;  %v868_v4 = vsel %vm95_vm0, %v851_v46, 0.0 }
 0x1f5   :  { %v1657_v43 = vpop.eup %1210  ;;  %v819_v53 = vadd.f32 %v818_v29, %v817_v48  ;;  %v808_v17 = vadd.f32 %v807_v33, %v806_v40  ;;  %v809_v28 = vsel %vm95_vm0, %v1648_v63, 0.0  ;;  %v850_v37 = vmul.f32 %v1648_v63, %v1477_v32 }
 0x1f6   :  { %v1665_v10 = vpop.eup %1212  ;;  %v858_v62 = vsel %vm95_vm0, %v842_v60, 0.0  ;;  %v859_v59 = vsel %vm95_vm0, %v846_v14, 0.0  ;;  %v811_v23 = vsel %vm95_vm0, %v1657_v43, 0.0  ;;  %v870_v1 = vsel %vm95_vm0, %v855_v49, 0.0 }
 0x1f7   :  { %v1673_v26 = vpop.eup %1214  ;;  %1228 = vrcp.f32 %v819_v53  ;;  %v810_v22 = vadd.f32 %v809_v28, %v808_v17  ;;  %v827_v5 = vsel %vm95_vm0, %v1665_v10, 0.0  ;;  %v854_v0 = vmul.f32 %v1657_v43, %v1493_v36 }
 0x1f8   :  { %v1677_v50 = vpop.eup %1216  ;;  %v828_v32 = vsel %vm95_vm0, %v1673_v26, 0.0  ;;  %v860_v20 = vadd.f32 %v859_v59, %v858_v62  ;;  %v845_v44 = vmul.f32 %v1665_v10, %v1457_v27  ;;  %v849_v42 = vmul.f32 %v1673_v26, %v1475_v31 }
 0x1f9   :  { %v1685_v6 = vpop.eup %1218  ;;  %v812_v3 = vadd.f32 %v811_v23, %v810_v22  ;;  %v829_v51 = vadd.f32 %v828_v32, %v827_v5  ;;  %v830_v41 = vsel %vm95_vm0, %v1677_v50, 0.0  ;;  %v861_v13 = vsel %vm95_vm0, %v850_v37, 0.0 }
 0x1fa   :  { %v1221_v11 = vpop.eup %1220  ;;  %v832_v54 = vsel %vm95_vm0, %v1685_v6, 0.0  ;;  %v853_v31 = vmul.f32 %v1677_v50, %v1491_v35  ;;  %v857_v29 = vmul.f32 %v1685_v6, %v1507_v39  ;;  %v862_v40 = vadd.f32 %v861_v13, %v860_v20 }
 0x1fb   :  { %v1223_v55 = vpop.eup %1222  ;;  %1230 = vrcp.f32 %v812_v3  ;;  %v831_v61 = vadd.f32 %v830_v41, %v829_v51  ;;  %v820_v7 = vsel %vm95_vm0, %v1221_v11, 0.0  ;;  %v844_v36 = vmul.f32 %v1221_v11, %v1445_v25  ;;  %v1798_v41 = vld [vmem:[#allocation17_spill] sm:$0xff] }
 0x1fc   :  { %v1225_v8 = vpop.eup %1224  ;;  %v821_v56 = vsel %vm95_vm0, %v1223_v55, 0.0  ;;  %v848_v27 = vmul.f32 %v1223_v55, %v1469_v30  ;;  %v869_v33 = vadd.f32 %v868_v4, %v867_v12  ;;  %v863_v30 = vsel %vm95_vm0, %v854_v0, 0.0 }
 0x1fd   :  { %v1227_v46 = vpop.eup %1226  ;;  %v833_v52 = vadd.f32 %v832_v54, %v831_v61  ;;  %v822_v48 = vadd.f32 %v821_v56, %v820_v7  ;;  %v823_v25 = vsel %vm95_vm0, %v1225_v8, 0.0  ;;  %v852_v60 = vmul.f32 %v1225_v8, %v1485_v34  ;;  %v1802_v7 = vld [vmem:[#allocation13_spill] sm:$0xff] }
 0x1fe   :  { %v872_v14 = vsel %vm95_vm0, %v844_v36, 0.0  ;;  %v873_v35 = vsel %vm95_vm0, %v848_v27, 0.0  ;;  %v825_v45 = vsel %vm95_vm0, %v1227_v46, 0.0  ;;  %v879_v17 = vsel %vm95_vm0, %v845_v44, 0.0 }
 0x1ff   :  { %1232 = vrcp.f32 %v833_v52  ;;  %v824_v49 = vadd.f32 %v823_v25, %v822_v48  ;;  %v874_v53 = vadd.f32 %v873_v35, %v872_v14  ;;  %v880_v39 = vsel %vm95_vm0, %v849_v42, 0.0  ;;  %v1800_v42 = vld [vmem:[#allocation11_spill] sm:$0xff] }
 0x200   :  { %v856_v37 = vmul.f32 %v1227_v46, %v1501_v38  ;;  %v864_v34 = vadd.f32 %v863_v30, %v862_v40  ;;  %v881_v62 = vadd.f32 %v880_v39, %v879_v17  ;;  %v871_v59 = vadd.f32 %v870_v1, %v869_v33 }
 0x201   :  { %v826_v28 = vadd.f32 %v825_v45, %v824_v49  ;;  %v875_v22 = vsel %vm95_vm0, %v852_v60, 0.0  ;;  %v882_v5 = vsel %vm95_vm0, %v853_v31, 0.0  ;;  %v894_v12 = vmul.f32 %v1632_v58, %v1387_v9  ;;  %v1799_v58 = vld [vmem:[#allocation18_spill] sm:$0xff] }
 0x202   :  { %v883_v23 = vadd.f32 %v882_v5, %v881_v62  ;;  %v884_v32 = vsel %vm95_vm0, %v857_v29, 0.0  ;;  %v898_v4 = vmul.f32 %v1640_v24, %v1423_v19  ;;  %v876_v51 = vadd.f32 %v875_v22, %v874_v53  ;;  %v1801_v19 = vld [vmem:[#allocation12_spill] sm:$0xff] }
 0x203   :  { %1234 = vrcp.f32 %v826_v28  ;;  %v896_v38 = vmul.f32 %v1221_v11, %v1407_v15  ;;  %v897_v1 = vmul.f32 %v1665_v10, %v1419_v18  ;;  %v902_v0 = vmul.f32 %v1648_v63, %v1365_v2  ;;  %v1803_v2 = vld [vmem:[#allocation14_spill] sm:$0xff]  ;;  %v1804_v10 = vld [vmem:[#allocation15_spill] sm:$0xff] }
 0x204   :  { %v1229_v3 = vpop.eup %1228  ;;  %v900_v9 = vmul.f32 %v1223_v55, %v1798_v41  ;;  %v901_v44 = vmul.f32 %v1673_v26, %v1799_v58  ;;  %v904_v13 = vmul.f32 %v1225_v8, %v1800_v42  ;;  %v885_v61 = vadd.f32 %v884_v32, %v883_v23  ;;  %v1805_v8 = vld [vmem:[#allocation16_spill] sm:$0xff] }
 0x205   :  { %v887_v20 = vmul.f32 %v1229_v3, %v871_v59  ;;  %v905_v24 = vmul.f32 %v1677_v50, %v1801_v19  ;;  %v906_v15 = vmul.f32 %v1657_v43, %v1802_v7  ;;  %v910_v18 = vsel %vm95_vm0, %v894_v12, 0.0 }
 0x206   :  { %v907_v63 = vmul.f32 %v1630_v57, %v1803_v2  ;;  %v908_v11 = vmul.f32 %v1227_v46, %v1804_v10  ;;  %v911_v26 = vsel %vm95_vm0, %v898_v4, 0.0  ;;  %v917_v55 = vsel %vm95_vm0, %v1638_v47, 0.0 }
 0x207   :  { %891 = vst.msk [vmem:[#allocation7 + $0x8] sm:$0xff] %vm95_vm0, %v887_v20  ;;  %v909_v50 = vmul.f32 %v1685_v6, %v1805_v8  ;;  %v912_v54 = vadd.f32 %v911_v26, %v910_v18  ;;  %v913_v43 = vsel %vm95_vm0, %v902_v0, 0.0  ;;  %v918_v56 = vsel %vm95_vm0, %v1660_v16, 0.0 }
 0x208   :  { %v1231_v36 = vpop.eup %1230  ;;  %v919_v31 = vadd.f32 %v918_v56, %v917_v55  ;;  %v924_v57 = vsel %vm95_vm0, %v896_v38, 0.0  ;;  %v925_v46 = vsel %vm95_vm0, %v900_v9, 0.0  ;;  %v915_v48 = vsel %vm95_vm0, %v906_v15, 0.0 }
 0x209   :  { %v886_v27 = vmul.f32 %v1231_v36, %v864_v34  ;;  %v914_v52 = vadd.f32 %v913_v43, %v912_v54  ;;  %v920_v47 = vsel %vm95_vm0, %v1663_v21, 0.0  ;;  %v926_v29 = vadd.f32 %v925_v46, %v924_v57 }
 0x20a   :  { %v921_v6 = vadd.f32 %v920_v47, %v919_v31  ;;  %v927_v40 = vsel %vm95_vm0, %v904_v13, 0.0  ;;  %v931_v16 = vsel %vm95_vm0, %v897_v1, 0.0  ;;  %v932_v25 = vsel %vm95_vm0, %v901_v44, 0.0 }
 0x20b   :  { %890 = vst.msk [vmem:[#allocation7] sm:$0xff] %vm95_vm0, %v886_v27  ;;  %v916_v33 = vadd.f32 %v915_v48, %v914_v52  ;;  %v922_v14 = vsel %vm95_vm0, %v907_v63, 0.0  ;;  %v928_v49 = vadd.f32 %v927_v40, %v926_v29  ;;  %v933_v30 = vadd.f32 %v932_v25, %v931_v16 }
 0x20c   :  { %v1233_v60 = vpop.eup %1232  ;;  %v923_v45 = vadd.f32 %v922_v14, %v921_v6  ;;  %v934_v21 = vsel %vm95_vm0, %v905_v24, 0.0  ;;  %v877_v53 = vsel %vm95_vm0, %v856_v37, 0.0  ;;  %v929_v17 = vsel %vm95_vm0, %v908_v11, 0.0 }
 0x20d   :  { %v889_v35 = vmul.f32 %v1233_v60, %v885_v61  ;;  %v935_v39 = vadd.f32 %v934_v21, %v933_v30  ;;  %v938_v28 = vmul.f32 %v1231_v36, %v916_v33  ;;  %v878_v34 = vadd.f32 %v877_v53, %v876_v51 }
 0x20e   :  { %v930_v62 = vadd.f32 %v929_v17, %v928_v49  ;;  %v936_v59 = vsel %vm95_vm0, %v909_v50, 0.0  ;;  %v939_v22 = vmul.f32 %v1229_v3, %v923_v45 }
 0x20f   :  { %893 = vst.msk [vmem:[#allocation7 + $0x18] sm:$0xff] %vm95_vm0, %v889_v35  ;;  %v937_v12 = vadd.f32 %v936_v59, %v935_v39  ;;  %943 = vst.msk [vmem:[#allocation7 + $0x20] sm:$0xff] %vm95_vm0, %v938_v28 }
 0x210   :  { %v1235_v5 = vpop.eup %1234  ;;  %944 = vst.msk [vmem:[#allocation7 + $0x28] sm:$0xff] %vm95_vm0, %v939_v22 }
 0x211   :  { %v888_v23 = vmul.f32 %v1235_v5, %v878_v34  ;;  %v940_v32 = vmul.f32 %v1235_v5, %v930_v62  ;;  %v941_v37 = vmul.f32 %v1233_v60, %v937_v12 }
 0x213   :  { %892 = vst.msk [vmem:[#allocation7 + $0x10] sm:$0xff] %vm95_vm0, %v888_v23  ;;  %945 = vst.msk [vmem:[#allocation7 + $0x30] sm:$0xff] %vm95_vm0, %v940_v32 }
 0x214   :  { %946 = vst.msk [vmem:[#allocation7 + $0x38] sm:$0xff] %vm95_vm0, %v941_v37 }
 0x215   :  { %1287 = shalt.err (!%p1284_p0)
}
 0x216   :  { %958 = dma.vmem_to_hbm [thread:$0]  %s953_s20, 1024, %s1781_s7, [#allocation4], %s1303_s27, %s1303_s27, %s1304_s28  }
 0x217   :  { %1300 = dma.done.wait [#allocation4], 1024  }
 0x218   :  { %1301 = vsyncadd [#allocation4], 4294966272 }
 0x219   :  { %962 = vsyncpa [#allocation3], 1 }
 0x21a   :  { %963 = vsyncpa [#allocation6], 1 }
 0x21b   :  { %964 = vsyncpa [#allocation4], 1 }

</bundles_post_ra>
